<compile_context>
chip_gen: v5e
topology: v5e:2x2
jax: 0.10.0
libtpu: 0.0.40
codegen_flags: <defaults>
</compile_context>

<pallas_src>
import functools

import jax
import jax.numpy as jnp
from jax import lax
from jax.experimental import pallas as pl
from jax.experimental.pallas import tpu as pltpu

EMBED = 768          # fixed by Conv1d(in_channels=768, ...)
MIN_SEQ = 24         # forward pads seq dim up to 24
NUM_MODELS = 5       # nn.ModuleList([nn.Linear(ins_num, 2) for _ in range(5)])
LANES = 128          # TPU lane width
SUBLANES = 8


def make_bert_tcr_kernel(kernel_size, filter_num, batch, seq_len):
    """Builds the Pallas kernel body for fixed static config."""
    sum_f = sum(filter_num)
    max_h = max(kernel_size)

    def kernel(x_ref, w_ref, p_ref, out_ref):
        # ---- one MXU pass for the whole conv stack (all branches, all taps) --
        # (R, 768) @ (768, 128-padded) -> (R, 128); tap t lives in lanes
        # [t*sum_f, (t+1)*sum_f); lanes for taps >= a branch's kernel size are
        # zero weight columns -> zero activations (safe to sum unconditionally).
        y = jnp.dot(x_ref[...], w_ref[...], preferred_element_type=jnp.float32)

        # ---- packed small parameters (single (8,128) vreg) ------------------
        p = p_ref[...]
        conv_b = p[0:1, 0:sum_f]            # concatenated conv biases
        fc_w = p[1:2, 0:sum_f]              # fc weight row
        fc_b = p[2:3, 0:1]                  # (1, 1)
        bsum0 = p[3:4, 0:1]                 # sum_i model_b[i][0]
        bsum1 = p[3:4, 1:2]                 # sum_i model_b[i][1]
        wsum0 = p[4:5, :]                   # sum_i model_w[i][0, :]
        wsum1 = p[5:6, :]                   # sum_i model_w[i][1, :]
        thresh = p[6:7, 0:sum_f]            # per-lane L - h (VALID conv length)

        # Static validity mask (built once, reused for every sample): position p
        # is valid for a feature lane iff p <= L - h(lane).
        pos = lax.broadcasted_iota(jnp.int32, (seq_len, sum_f), 0)
        valid = pos.astype(jnp.float32) <= thresh            # (L, sum_f)

        # ---- per-sample tap-sum / sigmoid / max-pool / fc on VPU+XLU --------
        logits = []                          # list of (1, 1)
        for b in range(batch):
            base = b * seq_len
            # Conv1d (stride 1, VALID) = sum of row-shifted tap lane-blocks.
            acc = y[base:base + seq_len, 0:sum_f]
            for t in range(1, max_h):
                acc = acc + y[base + t:base + t + seq_len,
                              t * sum_f:(t + 1) * sum_f]
            # Bias, mask invalid positions (sigmoid(-1e9) -> 0 < any valid).
            acc = jnp.where(valid, acc + conv_b, -1e9)
            sig = jax.nn.sigmoid(acc)                          # EUP
            feat = jnp.max(sig, axis=0, keepdims=True)         # AdaptiveMaxPool1d(1)
            # fc layer for this sample (VPU mul + XLU reduce).
            logit = fc_b + jnp.sum(feat * fc_w, axis=1, keepdims=True)
            logits.append(logit)

        # ---- ensemble: pre-summed weights, pure VPU/XLU ---------------------
        # Zero padding of the (B,) vector up to ins_num contributes nothing,
        # so only the first B lanes of the summed weights matter.
        logits_vec = (jnp.concatenate(logits, axis=1)
                      if batch > 1 else logits[0])            # (1, B)
        pred0 = bsum0 + jnp.sum(logits_vec * wsum0[:, :batch],
                                axis=1, keepdims=True)
        pred1 = bsum1 + jnp.sum(logits_vec * wsum1[:, :batch],
                                axis=1, keepdims=True)
        pred = jnp.concatenate([pred0, pred1], axis=1)        # (1, 2)
        # TODO(synk): Dropout layers are identity here (inference / eval mode).
        out_ref[...] = jax.nn.sigmoid(pred / float(NUM_MODELS))

    return kernel


def _pack_weight_slab(params, filter_num, kernel_size):
    """Fuse all conv weights into one (768, 128) TAP-major slab.

    Lane layout: tap t occupies lanes [t*sum_f, (t+1)*sum_f); within a tap
    block, features follow the torch concatenation order (conv0 filters,
    conv1 filters, ...). Taps beyond a branch's kernel size stay zero.
    """
    sum_f = sum(filter_num)
    max_h = max(kernel_size)
    assert max_h * sum_f <= LANES, "fused tap-major slab must fit in 128 lanes"
    slab = jnp.zeros((EMBED, LANES), jnp.float32)
    fo = 0
    for idx, (f, h) in enumerate(zip(filter_num, kernel_size)):
        w = params["conv_w"][idx]                       # (f, 768, h) torch layout
        for t in range(h):
            col = t * sum_f + fo
            slab = slab.at[:, col:col + f].set(jnp.transpose(w[:, :, t]))
        fo += f
    return slab


def _pack_param_slab(params, filter_num, kernel_size, ins_num, seq_len):
    """Pack all small parameters into a single (8, 128) f32 slab."""
    sum_f = sum(filter_num)
    assert sum_f <= LANES and ins_num <= LANES
    slab = jnp.zeros((SUBLANES, LANES), jnp.float32)
    slab = slab.at[0, :sum_f].set(jnp.concatenate(list(params["conv_b"])))
    slab = slab.at[1, :sum_f].set(params["fc_w"][0])
    slab = slab.at[2, 0].set(params["fc_b"][0])
    wsum = sum(params["model_w"])   # exact: ensemble is linear before sigmoid
    bsum = sum(params["model_b"])
    slab = slab.at[3, :2].set(bsum)
    slab = slab.at[4, :ins_num].set(wsum[0])
    slab = slab.at[5, :ins_num].set(wsum[1])
    # Per-feature-lane last valid conv position (L - h), for in-kernel masking.
    thresh = jnp.concatenate(
        [jnp.full((f,), float(seq_len - h), jnp.float32)
         for f, h in zip(filter_num, kernel_size)])
    slab = slab.at[6, :sum_f].set(thresh)
    return slab


def bert_tcr_forward(x, params, *, filter_num, kernel_size, ins_num):
    """Glue: seq padding, weight fusion/packing, pallas_call."""
    if x.shape[1] < MIN_SEQ:
        x = jnp.pad(x, ((0, 0), (0, MIN_SEQ - x.shape[1]), (0, 0)))
    batch, seq_len, emb = x.shape
    assert emb == EMBED
    assert batch >= 2, "squeeze() path in the PyTorch module needs batch >= 2"
    assert batch <= ins_num
    max_h = max(kernel_size)
    assert seq_len >= max_h

    # Flatten to (B*L, 768) and pad rows to a sublane multiple, with at least
    # max_h-1 trailing zero rows so the last sample's tap shifts stay in bounds.
    x_flat = x.reshape(batch * seq_len, EMBED)
    rows = batch * seq_len
    rows_pad = -(-(rows + max_h - 1) // SUBLANES) * SUBLANES
    x_flat = jnp.pad(x_flat, ((0, rows_pad - rows), (0, 0)))

    w_all = _pack_weight_slab(params, filter_num, kernel_size)        # (768, 128)
    p_slab = _pack_param_slab(params, filter_num, kernel_size,
                              ins_num, seq_len)                       # (8, 128)

    kernel = make_bert_tcr_kernel(tuple(kernel_size), tuple(filter_num),
                                  batch, seq_len)
    vmem = pl.BlockSpec(memory_space=pltpu.MemorySpace.VMEM)
    return pl.pallas_call(
        kernel,
        out_shape=jax.ShapeDtypeStruct((1, 2), jnp.float32),
        in_specs=[vmem, vmem, vmem],
        out_specs=vmem,
    )(x_flat, w_all, p_slab)


def bert_tcr_reference(x, params, *, filter_num, kernel_size, ins_num):
    """Plain-JAX mirror of the PyTorch forward (eval-mode dropout)."""
    if x.shape[1] < MIN_SEQ:
        x = jnp.pad(x, ((0, 0), (0, MIN_SEQ - x.shape[1]), (0, 0)))
    xc = jnp.transpose(x, (0, 2, 1))                    # (B, 768, L)
    feats = []
    for w, b in zip(params["conv_w"], params["conv_b"]):  # w: (f, 768, h)
        y = lax.conv_general_dilated(xc, w, (1,), "VALID",
                                     dimension_numbers=("NCH", "OIH", "NCH"))
        y = y + b[None, :, None]
        y = jax.nn.sigmoid(y)
        feats.append(jnp.max(y, axis=-1))               # (B, f)
    feat = jnp.concatenate(feats, axis=1)               # (B, sum_f)
    out = feat @ params["fc_w"].T + params["fc_b"]      # (B, 1)
    vec = out[:, 0]                                     # squeeze -> (B,)
    vec = jnp.pad(vec, (0, ins_num - vec.shape[0]))[None, :]   # (1, ins_num)
    pred_sum = jnp.zeros((1, 2), jnp.float32)
    for w, b in zip(params["model_w"], params["model_b"]):
        pred_sum = pred_sum + vec @ w.T + b
    return jax.nn.sigmoid(pred_sum / float(NUM_MODELS))


def init_params(key, filter_num, kernel_size, ins_num):
    keys = jax.random.split(key, 4 + 2 * len(filter_num) + 2 * NUM_MODELS)
    ki = iter(keys)
    params = {
        "conv_w": [0.05 * jax.random.normal(next(ki), (f, EMBED, h), jnp.float32)
                   for f, h in zip(filter_num, kernel_size)],
        "conv_b": [0.05 * jax.random.normal(next(ki), (f,), jnp.float32)
                   for f in filter_num],
        "fc_w": 0.1 * jax.random.normal(next(ki), (1, sum(filter_num)), jnp.float32),
        "fc_b": 0.1 * jax.random.normal(next(ki), (1,), jnp.float32),
        "model_w": [0.1 * jax.random.normal(next(ki), (2, ins_num), jnp.float32)
                    for _ in range(NUM_MODELS)],
        "model_b": [0.1 * jax.random.normal(next(ki), (2,), jnp.float32)
                    for _ in range(NUM_MODELS)],
    }
    return params


if __name__ == "__main__":
    filter_num = [3, 2, 1]
    kernel_size = [2, 3, 4]
    ins_num = 8
    batch, seq_in = 2, 16          # seq_in < 24 -> exercises the padding branch

    key = jax.random.PRNGKey(0)
    kx, kp = jax.random.split(key)
    x = jax.random.normal(kx, (batch, seq_in, EMBED), jnp.float32)
    params = init_params(kp, filter_num, kernel_size, ins_num)

    fwd = functools.partial(bert_tcr_forward, filter_num=filter_num,
                            kernel_size=kernel_size, ins_num=ins_num)
    out = jax.jit(lambda x: fwd(x, params))(x)
    out = jax.block_until_ready(out)

    ref = bert_tcr_reference(x, params, filter_num=filter_num,
                             kernel_size=kernel_size, ins_num=ins_num)
    assert out.shape == (1, 2)
    assert jnp.allclose(out, ref, rtol=1e-5, atol=1e-5), (out, ref)

    print("KERNEL_OK")
</pallas_src>

<mosaic_0001>
module attributes {stable_mosaic.version = 11 : i64} {
  func.func @kernel(%arg0: memref<56x768xf32, #tpu.memory_space<vmem>>, %arg1: memref<768x128xf32, #tpu.memory_space<vmem>>, %arg2: memref<8x128xf32, #tpu.memory_space<vmem>>, %arg3: memref<1x2xf32, #tpu.memory_space<vmem>>) attributes {dimension_semantics = [], scalar_prefetch = 0 : i64, scratch_operands = 0 : i64, tpu.core_type = #tpu.core_type<tc>} {
    %c0 = arith.constant 0 : index
    %c0_0 = arith.constant 0 : index
    %0 = vector.load %arg0[%c0, %c0_0] : memref<56x768xf32, #tpu.memory_space<vmem>>, vector<56x768xf32>
    %c0_1 = arith.constant 0 : index
    %c0_2 = arith.constant 0 : index
    %1 = vector.load %arg1[%c0_1, %c0_2] : memref<768x128xf32, #tpu.memory_space<vmem>>, vector<768x128xf32>
    %cst = arith.constant dense<0.000000e+00> : vector<56x128xf32>
    %2 = tpu.matmul %0, %1, %cst {dimension_numbers = #tpu.dot_dimension_numbers<[1], [0], [0], [1], [0, 0, 1, 1], [], []>} : vector<56x768xf32>, vector<768x128xf32>, vector<56x128xf32> -> vector<56x128xf32>
    %c0_3 = arith.constant 0 : index
    %c0_4 = arith.constant 0 : index
    %3 = vector.load %arg2[%c0_3, %c0_4] : memref<8x128xf32, #tpu.memory_space<vmem>>, vector<8x128xf32>
    %4 = vector.extract_strided_slice %3 {offsets = [0, 0], sizes = [1, 6], strides = [1, 1]} : vector<8x128xf32> to vector<1x6xf32>
    %5 = vector.extract_strided_slice %3 {offsets = [1, 0], sizes = [1, 6], strides = [1, 1]} : vector<8x128xf32> to vector<1x6xf32>
    %6 = vector.extract_strided_slice %3 {offsets = [2, 0], sizes = [1, 1], strides = [1, 1]} : vector<8x128xf32> to vector<1x1xf32>
    %7 = vector.extract_strided_slice %3 {offsets = [3, 0], sizes = [1, 1], strides = [1, 1]} : vector<8x128xf32> to vector<1x1xf32>
    %8 = vector.extract_strided_slice %3 {offsets = [3, 1], sizes = [1, 1], strides = [1, 1]} : vector<8x128xf32> to vector<1x1xf32>
    %9 = vector.extract_strided_slice %3 {offsets = [4, 0], sizes = [1, 128], strides = [1, 1]} : vector<8x128xf32> to vector<1x128xf32>
    %10 = vector.extract_strided_slice %3 {offsets = [5, 0], sizes = [1, 128], strides = [1, 1]} : vector<8x128xf32> to vector<1x128xf32>
    %11 = vector.extract_strided_slice %3 {offsets = [6, 0], sizes = [1, 6], strides = [1, 1]} : vector<8x128xf32> to vector<1x6xf32>
    %12 = tpu.iota {dimensions = array<i32: 0>} : vector<24x6xi32>
    %13 = arith.sitofp %12 : vector<24x6xi32> to vector<24x6xf32>
    %14 = vector.broadcast %11 : vector<1x6xf32> to vector<24x6xf32>
    %15 = arith.cmpf ole, %13, %14 : vector<24x6xf32>
    %16 = vector.extract_strided_slice %2 {offsets = [0, 0], sizes = [24, 6], strides = [1, 1]} : vector<56x128xf32> to vector<24x6xf32>
    %17 = vector.extract_strided_slice %2 {offsets = [1, 6], sizes = [24, 6], strides = [1, 1]} : vector<56x128xf32> to vector<24x6xf32>
    %18 = arith.addf %16, %17 : vector<24x6xf32>
    %19 = vector.extract_strided_slice %2 {offsets = [2, 12], sizes = [24, 6], strides = [1, 1]} : vector<56x128xf32> to vector<24x6xf32>
    %20 = arith.addf %18, %19 : vector<24x6xf32>
    %21 = vector.extract_strided_slice %2 {offsets = [3, 18], sizes = [24, 6], strides = [1, 1]} : vector<56x128xf32> to vector<24x6xf32>
    %22 = arith.addf %20, %21 : vector<24x6xf32>
    %23 = vector.broadcast %4 : vector<1x6xf32> to vector<24x6xf32>
    %24 = arith.addf %22, %23 : vector<24x6xf32>
    %cst_5 = arith.constant -1.000000e+09 : f32
    %25 = vector.broadcast %cst_5 : f32 to vector<24x6xf32>
    %26 = arith.select %15, %24, %25 : vector<24x6xi1>, vector<24x6xf32>
    %27 = arith.negf %26 : vector<24x6xf32>
    %28 = math.exp %27 : vector<24x6xf32>
    %cst_6 = arith.constant 1.000000e+00 : f32
    %29 = vector.broadcast %cst_6 : f32 to vector<24x6xf32>
    %30 = arith.addf %29, %28 : vector<24x6xf32>
    %31 = arith.divf %29, %30 : vector<24x6xf32>
    %cst_7 = arith.constant dense<0xFF800000> : vector<6xf32>
    %32 = vector.multi_reduction <maximumf>, %31, %cst_7 [0] : vector<24x6xf32> to vector<6xf32>
    %33 = vector.shape_cast %32 : vector<6xf32> to vector<1x6xf32>
    %34 = arith.mulf %33, %5 : vector<1x6xf32>
    %cst_8 = arith.constant dense<0.000000e+00> : vector<1xf32>
    %35 = vector.multi_reduction <add>, %34, %cst_8 [1] : vector<1x6xf32> to vector<1xf32>
    %36 = vector.shape_cast %35 : vector<1xf32> to vector<1x1xf32>
    %37 = arith.addf %6, %36 : vector<1x1xf32>
    %38 = vector.extract_strided_slice %2 {offsets = [24, 0], sizes = [24, 6], strides = [1, 1]} : vector<56x128xf32> to vector<24x6xf32>
    %39 = vector.extract_strided_slice %2 {offsets = [25, 6], sizes = [24, 6], strides = [1, 1]} : vector<56x128xf32> to vector<24x6xf32>
    %40 = arith.addf %38, %39 : vector<24x6xf32>
    %41 = vector.extract_strided_slice %2 {offsets = [26, 12], sizes = [24, 6], strides = [1, 1]} : vector<56x128xf32> to vector<24x6xf32>
    %42 = arith.addf %40, %41 : vector<24x6xf32>
    %43 = vector.extract_strided_slice %2 {offsets = [27, 18], sizes = [24, 6], strides = [1, 1]} : vector<56x128xf32> to vector<24x6xf32>
    %44 = arith.addf %42, %43 : vector<24x6xf32>
    %45 = vector.broadcast %4 : vector<1x6xf32> to vector<24x6xf32>
    %46 = arith.addf %44, %45 : vector<24x6xf32>
    %cst_9 = arith.constant -1.000000e+09 : f32
    %47 = vector.broadcast %cst_9 : f32 to vector<24x6xf32>
    %48 = arith.select %15, %46, %47 : vector<24x6xi1>, vector<24x6xf32>
    %49 = arith.negf %48 : vector<24x6xf32>
    %50 = math.exp %49 : vector<24x6xf32>
    %cst_10 = arith.constant 1.000000e+00 : f32
    %51 = vector.broadcast %cst_10 : f32 to vector<24x6xf32>
    %52 = arith.addf %51, %50 : vector<24x6xf32>
    %53 = arith.divf %51, %52 : vector<24x6xf32>
    %cst_11 = arith.constant dense<0xFF800000> : vector<6xf32>
    %54 = vector.multi_reduction <maximumf>, %53, %cst_11 [0] : vector<24x6xf32> to vector<6xf32>
    %55 = vector.shape_cast %54 : vector<6xf32> to vector<1x6xf32>
    %56 = arith.mulf %55, %5 : vector<1x6xf32>
    %cst_12 = arith.constant dense<0.000000e+00> : vector<1xf32>
    %57 = vector.multi_reduction <add>, %56, %cst_12 [1] : vector<1x6xf32> to vector<1xf32>
    %58 = vector.shape_cast %57 : vector<1xf32> to vector<1x1xf32>
    %59 = arith.addf %6, %58 : vector<1x1xf32>
    %60 = tpu.concatenate %37, %59 in 1 : vector<1x1xf32>, vector<1x1xf32> -> vector<1x2xf32>
    %61 = vector.extract_strided_slice %9 {offsets = [0, 0], sizes = [1, 2], strides = [1, 1]} : vector<1x128xf32> to vector<1x2xf32>
    %62 = arith.mulf %60, %61 : vector<1x2xf32>
    %cst_13 = arith.constant dense<0.000000e+00> : vector<1xf32>
    %63 = vector.multi_reduction <add>, %62, %cst_13 [1] : vector<1x2xf32> to vector<1xf32>
    %64 = vector.shape_cast %63 : vector<1xf32> to vector<1x1xf32>
    %65 = arith.addf %7, %64 : vector<1x1xf32>
    %66 = vector.extract_strided_slice %10 {offsets = [0, 0], sizes = [1, 2], strides = [1, 1]} : vector<1x128xf32> to vector<1x2xf32>
    %67 = arith.mulf %60, %66 : vector<1x2xf32>
    %cst_14 = arith.constant dense<0.000000e+00> : vector<1xf32>
    %68 = vector.multi_reduction <add>, %67, %cst_14 [1] : vector<1x2xf32> to vector<1xf32>
    %69 = vector.shape_cast %68 : vector<1xf32> to vector<1x1xf32>
    %70 = arith.addf %8, %69 : vector<1x1xf32>
    %71 = tpu.concatenate %65, %70 in 1 : vector<1x1xf32>, vector<1x1xf32> -> vector<1x2xf32>
    %cst_15 = arith.constant 5.000000e+00 : f32
    %72 = vector.broadcast %cst_15 : f32 to vector<1x2xf32>
    %73 = arith.divf %71, %72 : vector<1x2xf32>
    %74 = arith.negf %73 : vector<1x2xf32>
    %75 = math.exp %74 : vector<1x2xf32>
    %cst_16 = arith.constant 1.000000e+00 : f32
    %76 = vector.broadcast %cst_16 : f32 to vector<1x2xf32>
    %77 = arith.addf %76, %75 : vector<1x2xf32>
    %78 = arith.divf %76, %77 : vector<1x2xf32>
    %c0_17 = arith.constant 0 : index
    %c0_18 = arith.constant 0 : index
    %79 = vector.load %arg3[%c0_17, %c0_18] : memref<1x2xf32, #tpu.memory_space<vmem>>, vector<1x2xf32>
    tpu.vector_store %arg3[%c0_17, %c0_18], %78 {strides = array<i32>} : memref<1x2xf32, #tpu.memory_space<vmem>>, vector<1x2xf32>,
    return
  }
}

</mosaic_0001>

<bundles_post_ra>
// kernel: _lambda_.1
= control target key start
LH: loop header
LB: loop body
LE: loop exit
PB: predicated region body
PF: predicated region fallthrough
CT: control target
= control target key end

     0   :  { %s1508_s0 = inlined_call_operand.vmem [shape: f32[56,768], index: 0, kind: input, shape index: {}]   ;;  %s1509_s1 = inlined_call_operand.vmem [shape: f32[768,128], index: 1, kind: input, shape index: {}]   ;;  %s1510_s2 = inlined_call_operand.vmem [shape: f32[8,128], index: 2, kind: input, shape index: {}]   ;;  %s1511_s3 = inlined_call_operand.hbm [shape: f32[1,2], index: 3, kind: output, shape index: {}]  }
   0x1   :  { %v72_v0 = vld [vmem:[%s1509_s1 + $0x78] sm:$0xff]  ;;  %v71_v1 = vld [vmem:[%s1509_s1 + $0x70] sm:$0xff]  ;;  %v70_v4 = vld [vmem:[%s1509_s1 + $0x68] sm:$0xff] }
   0x2   :  { %v88_v2 = vld [vmem:[%s1509_s1 + $0xf8] sm:$0xff]  ;;  %762 = vmatpush.msra.mxu2 %v72_v0  ;;  %v87_v3 = vld [vmem:[%s1509_s1 + $0xf0] sm:$0xff]  ;;  %v86_v5 = vld [vmem:[%s1509_s1 + $0xe8] sm:$0xff]  ;;  %153 = vmatpush.msra.mxu0 %v72_v0 }
   0x3   :  { %778 = vmatpush.msra.mxu3 %v88_v2  ;;  %191 = vmatpush.msra.mxu1 %v88_v2  ;;  %v69_v6 = vld [vmem:[%s1509_s1 + $0x60] sm:$0xff]  ;;  %v68_v8 = vld [vmem:[%s1509_s1 + $0x58] sm:$0xff]  ;;  %v67_v10 = vld [vmem:[%s1509_s1 + $0x50] sm:$0xff] }
   0x4   :  { %763 = vmatpush.msra.mxu2 %v71_v1  ;;  %v85_v7 = vld [vmem:[%s1509_s1 + $0xe0] sm:$0xff]  ;;  %154 = vmatpush.msra.mxu0 %v71_v1  ;;  %v84_v9 = vld [vmem:[%s1509_s1 + $0xd8] sm:$0xff]  ;;  %v83_v11 = vld [vmem:[%s1509_s1 + $0xd0] sm:$0xff] }
   0x5   :  { %779 = vmatpush.msra.mxu3 %v87_v3  ;;  %192 = vmatpush.msra.mxu1 %v87_v3  ;;  %v66_v12 = vld [vmem:[%s1509_s1 + $0x48] sm:$0xff]  ;;  %v65_v14 = vld [vmem:[%s1509_s1 + $0x40] sm:$0xff]  ;;  %v64_v16 = vld [vmem:[%s1509_s1 + $0x38] sm:$0xff] }
   0x6   :  { %764 = vmatpush.msra.mxu2 %v70_v4  ;;  %155 = vmatpush.msra.mxu0 %v70_v4  ;;  %v82_v13 = vld [vmem:[%s1509_s1 + $0xc8] sm:$0xff]  ;;  %v81_v15 = vld [vmem:[%s1509_s1 + $0xc0] sm:$0xff]  ;;  %v80_v17 = vld [vmem:[%s1509_s1 + $0xb8] sm:$0xff] }
   0x7   :  { %780 = vmatpush.msra.mxu3 %v86_v5  ;;  %193 = vmatpush.msra.mxu1 %v86_v5  ;;  %v63_v18 = vld [vmem:[%s1509_s1 + $0x30] sm:$0xff]  ;;  %v62_v20 = vld [vmem:[%s1509_s1 + $0x28] sm:$0xff]  ;;  %v61_v22 = vld [vmem:[%s1509_s1 + $0x20] sm:$0xff] }
   0x8   :  { %765 = vmatpush.msra.mxu2 %v69_v6  ;;  %156 = vmatpush.msra.mxu0 %v69_v6  ;;  %v79_v19 = vld [vmem:[%s1509_s1 + $0xb0] sm:$0xff]  ;;  %v78_v21 = vld [vmem:[%s1509_s1 + $0xa8] sm:$0xff]  ;;  %v77_v23 = vld [vmem:[%s1509_s1 + $0xa0] sm:$0xff] }
   0x9   :  { %781 = vmatpush.msra.mxu3 %v85_v7  ;;  %194 = vmatpush.msra.mxu1 %v85_v7  ;;  %v60_v24 = vld [vmem:[%s1509_s1 + $0x18] sm:$0xff]  ;;  %v59_v26 = vld [vmem:[%s1509_s1 + $0x10] sm:$0xff]  ;;  %v58_v28 = vld [vmem:[%s1509_s1 + $0x8] sm:$0xff] }
   0xa   :  { %766 = vmatpush.msra.mxu2 %v68_v8  ;;  %157 = vmatpush.msra.mxu0 %v68_v8  ;;  %v76_v25 = vld [vmem:[%s1509_s1 + $0x98] sm:$0xff]  ;;  %v75_v27 = vld [vmem:[%s1509_s1 + $0x90] sm:$0xff]  ;;  %v74_v29 = vld [vmem:[%s1509_s1 + $0x88] sm:$0xff] }
   0xb   :  { %782 = vmatpush.msra.mxu3 %v84_v9  ;;  %195 = vmatpush.msra.mxu1 %v84_v9  ;;  %v57_v30 = vld [vmem:[%s1509_s1] sm:$0xff]  ;;  %v104_v32 = vld [vmem:[%s1509_s1 + $0x178] sm:$0xff]  ;;  %v40_v35 = vld [vmem:[%s1508_s0 + $0xc8] sm:$0xff] }
   0xc   :  { %767 = vmatpush.msra.mxu2 %v67_v10  ;;  %158 = vmatpush.msra.mxu0 %v67_v10  ;;  %v73_v31 = vld [vmem:[%s1509_s1 + $0x80] sm:$0xff]  ;;  %v120_v33 = vld [vmem:[%s1509_s1 + $0x1f8] sm:$0xff]  ;;  %v103_v36 = vld [vmem:[%s1509_s1 + $0x170] sm:$0xff] }
   0xd   :  { %783 = vmatpush.msra.mxu3 %v83_v11  ;;  %196 = vmatpush.msra.mxu1 %v83_v11  ;;  %v39_v34 = vld [vmem:[%s1508_s0 + $0xc0] sm:$0xff]  ;;  %v119_v37 = vld [vmem:[%s1509_s1 + $0x1f0] sm:$0xff] }
   0xe   :  { %768 = vmatpush.msra.mxu2 %v66_v12  ;;  %159 = vmatpush.msra.mxu0 %v66_v12 }
   0xf   :  { %784 = vmatpush.msra.mxu3 %v82_v13  ;;  %197 = vmatpush.msra.mxu1 %v82_v13 }
  0x10   :  { %769 = vmatpush.msra.mxu2 %v65_v14  ;;  %160 = vmatpush.msra.mxu0 %v65_v14 }
  0x11   :  { %785 = vmatpush.msra.mxu3 %v81_v15  ;;  %198 = vmatpush.msra.mxu1 %v81_v15 }
  0x12   :  { %770 = vmatpush.msra.mxu2 %v64_v16  ;;  %161 = vmatpush.msra.mxu0 %v64_v16 }
  0x13   :  { %786 = vmatpush.msra.mxu3 %v80_v17  ;;  %199 = vmatpush.msra.mxu1 %v80_v17 }
  0x14   :  { %771 = vmatpush.msra.mxu2 %v63_v18  ;;  %162 = vmatpush.msra.mxu0 %v63_v18 }
  0x15   :  { %787 = vmatpush.msra.mxu3 %v79_v19  ;;  %200 = vmatpush.msra.mxu1 %v79_v19 }
  0x16   :  { %772 = vmatpush.msra.mxu2 %v62_v20  ;;  %163 = vmatpush.msra.mxu0 %v62_v20 }
  0x17   :  { %788 = vmatpush.msra.mxu3 %v78_v21  ;;  %201 = vmatpush.msra.mxu1 %v78_v21 }
  0x18   :  { %773 = vmatpush.msra.mxu2 %v61_v22  ;;  %164 = vmatpush.msra.mxu0 %v61_v22 }
  0x19   :  { %789 = vmatpush.msra.mxu3 %v77_v23  ;;  %202 = vmatpush.msra.mxu1 %v77_v23 }
  0x1a   :  { %774 = vmatpush.msra.mxu2 %v60_v24  ;;  %165 = vmatpush.msra.mxu0 %v60_v24 }
  0x1b   :  { %790 = vmatpush.msra.mxu3 %v76_v25  ;;  %203 = vmatpush.msra.mxu1 %v76_v25 }
  0x1c   :  { %775 = vmatpush.msra.mxu2 %v59_v26  ;;  %166 = vmatpush.msra.mxu0 %v59_v26 }
  0x1d   :  { %791 = vmatpush.msra.mxu3 %v75_v27  ;;  %204 = vmatpush.msra.mxu1 %v75_v27 }
  0x1e   :  { %776 = vmatpush.msra.mxu2 %v58_v28  ;;  %167 = vmatpush.msra.mxu0 %v58_v28 }
  0x1f   :  { %792 = vmatpush.msra.mxu3 %v74_v29  ;;  %205 = vmatpush.msra.mxu1 %v74_v29 }
  0x20   :  { %777 = vmatpush.msra.mxu2 %v57_v30 }
  0x21   :  { %793 = vmatpush.msra.mxu3 %v73_v31 }
  0x22   :  { %229 = vmatpush.msrb.mxu2 %v104_v32 }
  0x23   :  { %267 = vmatpush.msrb.mxu3 %v120_v33 }
  0x24   :  { %8 = vsyncpa [#allocation3], 0  ;;  %v102_v38 = vld [vmem:[%s1509_s1 + $0x168] sm:$0xff]  ;;  %181 = vmatmul.f32.vlgmr.msra.gmra.mxu2 %v39_v34  ;;  %219 = vmatmul.f32.vlgmr.msra.gmra.mxu3 %v40_v35  ;;  %v15_v40 = vld [vmem:[%s1508_s0] sm:$0xff]  ;;  %vm417_vm0 = vcmask 1045504   ;;  %vm397_vm1 = vcmask 1046528  }
  0x25   :  { %v118_v39 = vld [vmem:[%s1509_s1 + $0x1e8] sm:$0xff]  ;;  %230 = vmatpush.msrb.mxu2 %v103_v36  ;;  %268 = vmatpush.msrb.mxu3 %v119_v37  ;;  %v101_v42 = vld [vmem:[%s1509_s1 + $0x160] sm:$0xff]  ;;  %v136_v44 = vld [vmem:[%s1509_s1 + $0x278] sm:$0xff]  ;;  %s857_s16 = smov 122   ;;  %vm437_vm2 = vcmask 1044480   ;;  %s858_s17 = smov 110  }
  0x26   :  { %v16_v41 = vld [vmem:[%s1508_s0 + $0x8] sm:$0xff]  ;;  %168 = vmatpush.msra.mxu0 %v57_v30  ;;  %206 = vmatpush.msra.mxu1 %v73_v31  ;;  %v117_v43 = vld [vmem:[%s1509_s1 + $0x1e0] sm:$0xff]  ;;  %v152_v45 = vld [vmem:[%s1509_s1 + $0x2f8] sm:$0xff]  ;;  %vm521_vm7 = vcmask 48128   ;;  %s861_s20 = smov [#allocation2]   ;;  %s746_s24 = sshll.u32 %s1511_s3, 4  ;;  %s747_s24 = int_to_ptr.hbm [resolvable:$true] %s746_s24 }
  0x27   :  { %231 = vmatpush.msrb.mxu2 %v102_v38  ;;  %269 = vmatpush.msrb.mxu3 %v118_v39  ;;  %v100_v46 = vld [vmem:[%s1509_s1 + $0x158] sm:$0xff]  ;;  %v135_v48 = vld [vmem:[%s1509_s1 + $0x270] sm:$0xff]  ;;  %v134_v52 = vld [vmem:[%s1509_s1 + $0x268] sm:$0xff]  ;;  %s744_s21 = sshll.u32 %s861_s20, 4  ;;  %s745_s21 = int_to_ptr.vmem [resolvable:$true] %s744_s21 }
  0x28   :  { %169 = vmatmul.f32.vlgmr.msra.gmra.mxu0 %v15_v40  ;;  %207 = vmatmul.f32.vlgmr.msra.gmra.mxu1 %v16_v41  ;;  %v116_v47 = vld [vmem:[%s1509_s1 + $0x1d8] sm:$0xff]  ;;  %v151_v49 = vld [vmem:[%s1509_s1 + $0x2f0] sm:$0xff]  ;;  %v98_v54 = vld [vmem:[%s1509_s1 + $0x148] sm:$0xff] }
  0x29   :  { %232 = vmatpush.msrb.mxu2 %v101_v42  ;;  %270 = vmatpush.msrb.mxu3 %v117_v43  ;;  %v99_v50 = vld [vmem:[%s1509_s1 + $0x150] sm:$0xff]  ;;  %v114_v55 = vld [vmem:[%s1509_s1 + $0x1c8] sm:$0xff]  ;;  %v46_v56 = vld [vmem:[%s1508_s0 + $0xf8] sm:$0xff] }
  0x2a   :  { %305 = vmatpush.msrb.mxu0 %v136_v44  ;;  %343 = vmatpush.msrb.mxu1 %v152_v45  ;;  %v115_v51 = vld [vmem:[%s1509_s1 + $0x1d0] sm:$0xff]  ;;  %v133_v57 = vld [vmem:[%s1509_s1 + $0x260] sm:$0xff]  ;;  %v150_v59 = vld [vmem:[%s1509_s1 + $0x2e8] sm:$0xff] }
  0x2b   :  { %233 = vmatpush.msrb.mxu2 %v100_v46  ;;  %271 = vmatpush.msrb.mxu3 %v116_v47  ;;  %v45_v53 = vld [vmem:[%s1508_s0 + $0xf0] sm:$0xff]  ;;  %v97_v58 = vld [vmem:[%s1509_s1 + $0x140] sm:$0xff]  ;;  %v96_v62 = vld [vmem:[%s1509_s1 + $0x138] sm:$0xff] }
  0x2c   :  { %306 = vmatpush.msrb.mxu0 %v135_v48  ;;  %344 = vmatpush.msrb.mxu1 %v151_v49  ;;  %v113_v60 = vld [vmem:[%s1509_s1 + $0x1c0] sm:$0xff]  ;;  %v21_v61 = vld [vmem:[%s1508_s0 + $0x30] sm:$0xff]  ;;  %v22_v63 = vld [vmem:[%s1508_s0 + $0x38] sm:$0xff] }
  0x2d   :  { %234 = vmatpush.msrb.mxu2 %v99_v50  ;;  %272 = vmatpush.msrb.mxu3 %v115_v51  ;;  %v132_v0 = vld [vmem:[%s1509_s1 + $0x258] sm:$0xff]  ;;  %v149_v1 = vld [vmem:[%s1509_s1 + $0x2e0] sm:$0xff]  ;;  %v95_v2 = vld [vmem:[%s1509_s1 + $0x130] sm:$0xff] }
  0x2e   :  { %307 = vmatpush.msrb.mxu0 %v134_v52  ;;  %184 = vmatmul.f32.gmra.mxu2 %v45_v53  ;;  %v112_v3 = vld [vmem:[%s1509_s1 + $0x1b8] sm:$0xff]  ;;  %v131_v4 = vld [vmem:[%s1509_s1 + $0x250] sm:$0xff]  ;;  %v94_v6 = vld [vmem:[%s1509_s1 + $0x128] sm:$0xff] }
  0x2f   :  { %235 = vmatpush.msrb.mxu2 %v98_v54  ;;  %273 = vmatpush.msrb.mxu3 %v114_v55  ;;  %v148_v5 = vld [vmem:[%s1509_s1 + $0x2d8] sm:$0xff]  ;;  %v111_v7 = vld [vmem:[%s1509_s1 + $0x1b0] sm:$0xff]  ;;  %v130_v8 = vld [vmem:[%s1509_s1 + $0x248] sm:$0xff] }
  0x30   :  { %222 = vmatmul.f32.gmra.mxu3 %v46_v56  ;;  %308 = vmatpush.msrb.mxu0 %v133_v57  ;;  %v147_v9 = vld [vmem:[%s1509_s1 + $0x2d0] sm:$0xff]  ;;  %v93_v10 = vld [vmem:[%s1509_s1 + $0x120] sm:$0xff]  ;;  %v110_v11 = vld [vmem:[%s1509_s1 + $0x1a8] sm:$0xff] }
  0x31   :  { %236 = vmatpush.msrb.mxu2 %v97_v58  ;;  %345 = vmatpush.msrb.mxu1 %v150_v59  ;;  %v51_v12 = vld [vmem:[%s1508_s0 + $0x120] sm:$0xff]  ;;  %v52_v13 = vld [vmem:[%s1508_s0 + $0x128] sm:$0xff]  ;;  %v92_v16 = vld [vmem:[%s1509_s1 + $0x118] sm:$0xff] }
  0x32   :  { %274 = vmatpush.msrb.mxu3 %v113_v60  ;;  %172 = vmatmul.f32.gmra.mxu0 %v21_v61  ;;  %v129_v14 = vld [vmem:[%s1509_s1 + $0x240] sm:$0xff]  ;;  %v146_v15 = vld [vmem:[%s1509_s1 + $0x2c8] sm:$0xff]  ;;  %v128_v20 = vld [vmem:[%s1509_s1 + $0x238] sm:$0xff] }
  0x33   :  { %237 = vmatpush.msrb.mxu2 %v96_v62  ;;  %210 = vmatmul.f32.gmra.mxu1 %v22_v63  ;;  %v109_v17 = vld [vmem:[%s1509_s1 + $0x1a0] sm:$0xff]  ;;  %v28_v19 = vld [vmem:[%s1508_s0 + $0x68] sm:$0xff]  ;;  %v91_v22 = vld [vmem:[%s1509_s1 + $0x110] sm:$0xff] }
  0x34   :  { %309 = vmatpush.msrb.mxu0 %v132_v0  ;;  %346 = vmatpush.msrb.mxu1 %v149_v1  ;;  %v27_v18 = vld [vmem:[%s1508_s0 + $0x60] sm:$0xff]  ;;  %v108_v23 = vld [vmem:[%s1509_s1 + $0x198] sm:$0xff]  ;;  %v127_v24 = vld [vmem:[%s1509_s1 + $0x230] sm:$0xff] }
  0x35   :  { %238 = vmatpush.msrb.mxu2 %v95_v2  ;;  %275 = vmatpush.msrb.mxu3 %v112_v3  ;;  %v145_v21 = vld [vmem:[%s1509_s1 + $0x2c0] sm:$0xff]  ;;  %v144_v25 = vld [vmem:[%s1509_s1 + $0x2b8] sm:$0xff]  ;;  %v90_v26 = vld [vmem:[%s1509_s1 + $0x108] sm:$0xff] }
  0x36   :  { %310 = vmatpush.msrb.mxu0 %v131_v4  ;;  %347 = vmatpush.msrb.mxu1 %v148_v5  ;;  %v107_v27 = vld [vmem:[%s1509_s1 + $0x190] sm:$0xff]  ;;  %v126_v28 = vld [vmem:[%s1509_s1 + $0x228] sm:$0xff]  ;;  %v89_v30 = vld [vmem:[%s1509_s1 + $0x100] sm:$0xff] }
  0x37   :  { %239 = vmatpush.msrb.mxu2 %v94_v6  ;;  %276 = vmatpush.msrb.mxu3 %v111_v7  ;;  %v143_v29 = vld [vmem:[%s1509_s1 + $0x2b0] sm:$0xff]  ;;  %v106_v31 = vld [vmem:[%s1509_s1 + $0x188] sm:$0xff]  ;;  %v125_v33 = vld [vmem:[%s1509_s1 + $0x220] sm:$0xff] }
  0x38   :  { %311 = vmatpush.msrb.mxu0 %v130_v8  ;;  %348 = vmatpush.msrb.mxu1 %v147_v9  ;;  %v17_v32 = vld [vmem:[%s1508_s0 + $0x10] sm:$0xff]  ;;  %v142_v34 = vld [vmem:[%s1509_s1 + $0x2a8] sm:$0xff]  ;;  %v105_v35 = vld [vmem:[%s1509_s1 + $0x180] sm:$0xff] }
  0x39   :  { %240 = vmatpush.msrb.mxu2 %v93_v10  ;;  %277 = vmatpush.msrb.mxu3 %v110_v11  ;;  %v33_v36 = vld [vmem:[%s1508_s0 + $0x90] sm:$0xff]  ;;  %v34_v37 = vld [vmem:[%s1508_s0 + $0x98] sm:$0xff]  ;;  %v141_v40 = vld [vmem:[%s1509_s1 + $0x2a0] sm:$0xff] }
  0x3a   :  { %187 = vmatmul.f32.gmra.mxu2 %v51_v12  ;;  %225 = vmatmul.f32.gmra.mxu3 %v52_v13  ;;  %v18_v38 = vld [vmem:[%s1508_s0 + $0x18] sm:$0xff]  ;;  %v123_v41 = vld [vmem:[%s1509_s1 + $0x210] sm:$0xff]  ;;  %v122_v43 = vld [vmem:[%s1509_s1 + $0x208] sm:$0xff] }
  0x3b   :  { %312 = vmatpush.msrb.mxu0 %v129_v14  ;;  %349 = vmatpush.msrb.mxu1 %v146_v15  ;;  %v124_v39 = vld [vmem:[%s1509_s1 + $0x218] sm:$0xff]  ;;  %v139_v44 = vld [vmem:[%s1509_s1 + $0x290] sm:$0xff]  ;;  %v23_v45 = vld [vmem:[%s1508_s0 + $0x40] sm:$0xff] }
  0x3c   :  { %241 = vmatpush.msrb.mxu2 %v92_v16  ;;  %278 = vmatpush.msrb.mxu3 %v109_v17  ;;  %v140_v42 = vld [vmem:[%s1509_s1 + $0x298] sm:$0xff]  ;;  %v121_v46 = vld [vmem:[%s1509_s1 + $0x200] sm:$0xff]  ;;  %v138_v47 = vld [vmem:[%s1509_s1 + $0x288] sm:$0xff] }
  0x3d   :  { %175 = vmatmul.f32.gmra.mxu0 %v27_v18  ;;  %213 = vmatmul.f32.gmra.mxu1 %v28_v19  ;;  %v19_v48 = vld [vmem:[%s1508_s0 + $0x20] sm:$0xff]  ;;  %v24_v49 = vld [vmem:[%s1508_s0 + $0x48] sm:$0xff]  ;;  %v29_v52 = vld [vmem:[%s1508_s0 + $0x70] sm:$0xff] }
  0x3e   :  { %313 = vmatpush.msrb.mxu0 %v128_v20  ;;  %350 = vmatpush.msrb.mxu1 %v145_v21  ;;  %v137_v50 = vld [vmem:[%s1509_s1 + $0x280] sm:$0xff]  ;;  %v20_v51 = vld [vmem:[%s1508_s0 + $0x28] sm:$0xff]  ;;  %v25_v53 = vld [vmem:[%s1508_s0 + $0x50] sm:$0xff] }
  0x3f   :  { %242 = vmatpush.msrb.mxu2 %v91_v22  ;;  %279 = vmatpush.msrb.mxu3 %v108_v23  ;;  %v30_v54 = vld [vmem:[%s1508_s0 + $0x78] sm:$0xff]  ;;  %v35_v56 = vld [vmem:[%s1508_s0 + $0xa0] sm:$0xff]  ;;  %v36_v58 = vld [vmem:[%s1508_s0 + $0xa8] sm:$0xff] }
  0x40   :  { %314 = vmatpush.msrb.mxu0 %v127_v24  ;;  %351 = vmatpush.msrb.mxu1 %v144_v25  ;;  %v26_v55 = vld [vmem:[%s1508_s0 + $0x58] sm:$0xff]  ;;  %v31_v57 = vld [vmem:[%s1508_s0 + $0x80] sm:$0xff]  ;;  %v32_v59 = vld [vmem:[%s1508_s0 + $0x88] sm:$0xff] }
  0x41   :  { %243 = vmatpush.msrb.mxu2 %v90_v26  ;;  %280 = vmatpush.msrb.mxu3 %v107_v27  ;;  %v41_v60 = vld [vmem:[%s1508_s0 + $0xd0] sm:$0xff]  ;;  %v42_v62 = vld [vmem:[%s1508_s0 + $0xd8] sm:$0xff]  ;;  %v47_v0 = vld [vmem:[%s1508_s0 + $0x100] sm:$0xff] }
  0x42   :  { %315 = vmatpush.msrb.mxu0 %v126_v28  ;;  %352 = vmatpush.msrb.mxu1 %v143_v29  ;;  %v37_v61 = vld [vmem:[%s1508_s0 + $0xb0] sm:$0xff]  ;;  %v38_v63 = vld [vmem:[%s1508_s0 + $0xb8] sm:$0xff]  ;;  %v43_v1 = vld [vmem:[%s1508_s0 + $0xe0] sm:$0xff] }
  0x43   :  { %244 = vmatpush.msrb.mxu2 %v89_v30  ;;  %281 = vmatpush.msrb.mxu3 %v106_v31  ;;  %v48_v2 = vld [vmem:[%s1508_s0 + $0x108] sm:$0xff]  ;;  %v53_v4 = vld [vmem:[%s1508_s0 + $0x130] sm:$0xff]  ;;  %v54_v6 = vld [vmem:[%s1508_s0 + $0x138] sm:$0xff] }
  0x44   :  { %245 = vmatmul.f32.vlgmr.msrb.gmra.mxu2 %v17_v32  ;;  %316 = vmatpush.msrb.mxu0 %v125_v33  ;;  %v44_v3 = vld [vmem:[%s1508_s0 + $0xe8] sm:$0xff]  ;;  %v49_v5 = vld [vmem:[%s1508_s0 + $0x110] sm:$0xff]  ;;  %v50_v7 = vld [vmem:[%s1508_s0 + $0x118] sm:$0xff] }
  0x45   :  { %353 = vmatpush.msrb.mxu1 %v142_v34  ;;  %282 = vmatpush.msrb.mxu3 %v105_v35  ;;  %v55_v8 = vld [vmem:[%s1508_s0 + $0x140] sm:$0xff]  ;;  %v56_v9 = vld [vmem:[%s1508_s0 + $0x148] sm:$0xff]  ;;  %s856_s0 = smov 116  }
  0x46   :  { %178 = vmatmul.f32.gmra.mxu0 %v33_v36  ;;  %216 = vmatmul.f32.gmra.mxu1 %v34_v37 }
  0x47   :  { %283 = vmatmul.f32.vlgmr.msrb.gmra.mxu3 %v18_v38  ;;  %317 = vmatpush.msrb.mxu0 %v124_v39 }
  0x48   :  { %354 = vmatpush.msrb.mxu1 %v141_v40 }
  0x49   :  { %318 = vmatpush.msrb.mxu0 %v123_v41 }
  0x4a   :  { %355 = vmatpush.msrb.mxu1 %v140_v42 }
  0x4b   :  { %319 = vmatpush.msrb.mxu0 %v122_v43 }
  0x4c   :  { %356 = vmatpush.msrb.mxu1 %v139_v44  ;;  %248 = vmatmul.f32.gmra.mxu2 %v23_v45 }
  0x4d   :  { %320 = vmatpush.msrb.mxu0 %v121_v46 }
  0x4e   :  { %357 = vmatpush.msrb.mxu1 %v138_v47  ;;  %321 = vmatmul.f32.vlgmr.msrb.gmra.mxu0 %v19_v48 }
  0x4f   :  { %286 = vmatmul.f32.gmra.mxu3 %v24_v49 }
  0x50   :  { %358 = vmatpush.msrb.mxu1 %v137_v50 }
  0x51   :  { %359 = vmatmul.f32.vlgmr.msrb.gmra.mxu1 %v20_v51 }
  0x54   :  { %251 = vmatmul.f32.gmra.mxu2 %v29_v52 }
  0x56   :  { %324 = vmatmul.f32.gmra.mxu0 %v25_v53 }
  0x57   :  { %289 = vmatmul.f32.gmra.mxu3 %v30_v54 }
  0x59   :  { %362 = vmatmul.f32.gmra.mxu1 %v26_v55 }
  0x5c   :  { %254 = vmatmul.f32.gmra.mxu2 %v35_v56 }
  0x5e   :  { %327 = vmatmul.f32.gmra.mxu0 %v31_v57 }
  0x5f   :  { %292 = vmatmul.f32.gmra.mxu3 %v36_v58 }
  0x61   :  { %365 = vmatmul.f32.gmra.mxu1 %v32_v59 }
  0x64   :  { %257 = vmatmul.f32.gmra.mxu2 %v41_v60 }
  0x66   :  { %330 = vmatmul.f32.gmra.mxu0 %v37_v61 }
  0x67   :  { %295 = vmatmul.f32.gmra.mxu3 %v42_v62 }
  0x69   :  { %368 = vmatmul.f32.gmra.mxu1 %v38_v63 }
  0x6c   :  { %260 = vmatmul.f32.gmra.mxu2 %v47_v0 }
  0x6e   :  { %333 = vmatmul.f32.gmra.mxu0 %v43_v1 }
  0x6f   :  { %298 = vmatmul.f32.gmra.mxu3 %v48_v2 }
  0x71   :  { %371 = vmatmul.f32.gmra.mxu1 %v44_v3 }
  0x74   :  { %263 = vmatmul.f32.gmra.mxu2 %v53_v4 }
  0x76   :  { %336 = vmatmul.f32.gmra.mxu0 %v49_v5 }
  0x77   :  { %301 = vmatmul.f32.gmra.mxu3 %v54_v6 }
  0x79   :  { %374 = vmatmul.f32.gmra.mxu1 %v50_v7 }
  0x7e   :  { %339 = vmatmul.f32.gmra.mxu0 %v55_v8 }
  0x81   :  { %377 = vmatmul.f32.gmra.mxu1 %v56_v9 }
  0xa5   :  { %v170_v10 = vpop.f32.mrf.mxu0  ;;  %v208_v11 = vpop.f32.mrf.mxu1 }
  0xa6   :  { %v1296_v12 = vadd.f32 %v208_v11, %v170_v10 }
  0xa7   :  { %v182_v13 = vpop.f32.mrf.mxu2  ;;  %v220_v14 = vpop.f32.mrf.mxu3 }
  0xa8   :  { %v221_v45 = vadd.f32 %v220_v14, %v182_v13 }
  0xaf   :  { %v173_v15 = vpop.f32.mrf.mxu0 }
  0xb0   :  { %v211_v16 = vpop.f32.mrf.mxu1 }
  0xb1   :  { %v1298_v17 = vadd.f32 %v211_v16, %v173_v15  ;;  %v185_v18 = vpop.f32.mrf.mxu2 }
  0xb3   :  { %v223_v19 = vpop.f32.mrf.mxu3 }
  0xb4   :  { %v224_v55 = vadd.f32 %v223_v19, %v185_v18 }
  0xba   :  { %v176_v20 = vpop.f32.mrf.mxu0  ;;  %v214_v21 = vpop.f32.mrf.mxu1 }
  0xbb   :  { %v1300_v22 = vadd.f32 %v214_v21, %v176_v20 }
  0xbd   :  { %v188_v23 = vpop.f32.mrf.mxu2  ;;  %v226_v24 = vpop.f32.mrf.mxu3 }
  0xbe   :  { %v227_v6 = vadd.f32 %v226_v24, %v188_v23 }
  0xc3   :  { %v179_v25 = vpop.f32.mrf.mxu0  ;;  %v217_v26 = vpop.f32.mrf.mxu1 }
  0xc4   :  { %v218_v39 = vadd.f32 %v217_v26, %v179_v25 }
  0xc7   :  { %v246_v27 = vpop.f32.mrf.mxu2 }
  0xc8   :  { %v247_v15 = vadd.f32 %v246_v27, %v1296_v12 }
  0xca   :  { %v1302_v28 = vpop.f32.mrf.mxu3 }
  0xcb   :  { %v1304_v29 = vpop.f32.mrf.mxu0  ;;  %v285_v24 = vadd.f32 %v1302_v28, %v247_v15 }
  0xce   :  { %v1306_v30 = vpop.f32.mrf.mxu1 }
  0xcf   :  { %v249_v31 = vpop.f32.mrf.mxu2 }
  0xd0   :  { %v250_v10 = vadd.f32 %v249_v31, %v1298_v17 }
  0xd2   :  { %v287_v32 = vpop.f32.mrf.mxu3 }
  0xd3   :  { %v1308_v33 = vpop.f32.mrf.mxu0  ;;  %v288_v23 = vadd.f32 %v287_v32, %v250_v10 }
  0xd5   :  { %v326_v12 = vadd.f32 %v1308_v33, %v288_v23 }
  0xd6   :  { %v1310_v34 = vpop.f32.mrf.mxu1 }
  0xd7   :  { %v252_v35 = vpop.f32.mrf.mxu2 }
  0xd8   :  { %v253_v26 = vadd.f32 %v252_v35, %v1300_v22  ;;  %v1354_v22 = vadd.f32 %v1310_v34, %v326_v12 }
  0xda   :  { %v1312_v36 = vpop.f32.mrf.mxu3  ;;  %v399_v34 = vrot.slane %v1354_v22, 1 }
  0xdb   :  { %v1314_v37 = vpop.f32.mrf.mxu0 }
  0xde   :  { %v1316_v38 = vpop.f32.mrf.mxu1 }
  0xdf   :  { %v255_v40 = vpop.f32.mrf.mxu2 }
  0xe0   :  { %v256_v41 = vadd.f32 %v255_v40, %v218_v39 }
  0xe2   :  { %v293_v42 = vpop.f32.mrf.mxu3 }
  0xe3   :  { %v331_v43 = vpop.f32.mrf.mxu0  ;;  %v294_v44 = vadd.f32 %v293_v42, %v256_v41  ;;  %v323_v41 = vadd.f32 %v1304_v29, %v285_v24  ;;  %v291_v42 = vadd.f32 %v1312_v36, %v253_v26 }
  0xe5   :  { %v332_v49 = vadd.f32 %v331_v43, %v294_v44  ;;  %v1361_v29 = vadd.f32 %v1306_v30, %v323_v41  ;;  %v329_v35 = vadd.f32 %v1314_v37, %v291_v42 }
  0xe6   :  { %v369_v46 = vpop.f32.mrf.mxu1 }
  0xe7   :  { %v258_v47 = vpop.f32.mrf.mxu2  ;;  %v1318_v53 = vadd.f32 %v369_v46, %v332_v49  ;;  %v367_v46 = vadd.f32 %v1316_v38, %v329_v35  ;;  %v419_v49 = vrot.slane %v1354_v22, 2 }
  0xe8   :  { %v259_v48 = vadd.f32 %v258_v47, %v221_v45  ;;  %v398_v45 = vrot.slane %v1361_v29, 1 }
  0xe9   :  { %v423_v60 = vrot.slane %v1318_v53, 2  ;;  %v403_v62 = vrot.slane %v1318_v53, 1  ;;  %v443_v32 = vrot.slane %v1318_v53, 3  ;;  %v401_v37 = vrot.slane %v367_v46, 1 }
  0xea   :  { %v296_v50 = vpop.f32.mrf.mxu3  ;;  %v400_v30 = vsel %vm397_vm1, %v398_v45, %v399_v34 }
  0xeb   :  { %v297_v51 = vadd.f32 %v296_v50, %v259_v48  ;;  %v334_v52 = vpop.f32.mrf.mxu0  ;;  %v418_v50 = vrot.slane %v1361_v29, 2  ;;  %v404_v38 = vsel %vm397_vm1, %v401_v37, %v403_v62 }
  0xed   :  { %v335_v54 = vadd.f32 %v334_v52, %v297_v51  ;;  %v402_v51 = vsel %vm397_vm1, %v399_v34, %v401_v37  ;;  %v420_v52 = vsel %vm417_vm0, %v418_v50, %v419_v49 }
  0xee   :  { %v372_v56 = vpop.f32.mrf.mxu1 }
  0xef   :  { %v1320_v57 = vadd.f32 %v372_v56, %v335_v54  ;;  %v261_v58 = vpop.f32.mrf.mxu2  ;;  %v421_v54 = vrot.slane %v367_v46, 2  ;;  %v438_v56 = vrot.slane %v1361_v29, 3 }
  0xf0   :  { %v262_v59 = vadd.f32 %v261_v58, %v224_v55  ;;  %v439_v55 = vrot.slane %v1354_v22, 3 }
  0xf1   :  { %v563_v61 = vrot.slane %v1320_v57, 2  ;;  %v545_v63 = vrot.slane %v1320_v57, 1  ;;  %v581_v27 = vrot.slane %v1320_v57, 3  ;;  %v422_v58 = vsel %vm417_vm0, %v419_v49, %v421_v54 }
  0xf2   :  { %v299_v0 = vpop.f32.mrf.mxu3 }
  0xf3   :  { %v300_v1 = vadd.f32 %v299_v0, %v262_v59  ;;  %v337_v2 = vpop.f32.mrf.mxu0  ;;  %v564_v3 = vsel %vm417_vm0, %v423_v60, %v563_v61  ;;  %v546_v4 = vsel %vm397_vm1, %v403_v62, %v545_v63  ;;  %v582_v33 = vsel %vm437_vm2, %v443_v32, %v581_v27 }
  0xf4   :  { %569 = vrot.lane.b32.xlu1 %v564_v3, %s856_s0  ;;  %551 = vrot.lane.b32.xlu0 %v546_v4, %s857_s16  ;;  %v424_v59 = vsel %vm417_vm0, %v421_v54, %v423_v60  ;;  %v441_v62 = vrot.slane %v367_v46, 3  ;;  %v382_v4 = vlaneseq }
  0xf5   :  { %v338_v5 = vadd.f32 %v337_v2, %v300_v1 }
  0xf6   :  { %v375_v7 = vpop.f32.mrf.mxu1  ;;  %v444_v0 = vsel %vm437_vm2, %v441_v62, %v443_v32 }
  0xf7   :  { %v1334_v8 = vadd.f32 %v375_v7, %v338_v5  ;;  %v264_v9 = vpop.f32.mrf.mxu2 }
  0xf8   :  { %v265_v11 = vadd.f32 %v264_v9, %v227_v6  ;;  %v383_v9 = vshrl.u32 %v382_v4, 7 }
  0xf9   :  { %v565_v13 = vrot.slane %v1334_v8, 2  ;;  %v547_v14 = vrot.slane %v1334_v8, 1  ;;  %v583_v44 = vrot.slane %v1334_v8, 3 }
  0xfa   :  { %v302_v16 = vpop.f32.mrf.mxu3 }
  0xfb   :  { %v303_v18 = vadd.f32 %v302_v16, %v265_v11  ;;  %v340_v19 = vpop.f32.mrf.mxu0  ;;  %v566_v20 = vsel %vm417_vm0, %v563_v61, %v565_v13  ;;  %v548_v21 = vsel %vm397_vm1, %v545_v63, %v547_v14  ;;  %v584_v48 = vsel %vm437_vm2, %v581_v27, %v583_v44  ;;  %v1402_v11 = vld [vmem:[%s1510_s2] sm:$0xff]  ;;  %s859_s2 = smov 1  }
  0xfc   :  { %571 = vrot.lane.b32.xlu2 %v566_v20, %s856_s0  ;;  %553 = vrot.lane.b32.xlu0 %v548_v21, %s857_s16  ;;  %v440_v61 = vsel %vm437_vm2, %v438_v56, %v439_v55  ;;  %v442_v63 = vsel %vm437_vm2, %v439_v55, %v441_v62  ;;  %v389_v15 = vperm.slane %v1402_v11, 6  ;;  %v1406_v16 = vperm.slane %v1402_v11, 0 }
  0xfd   :  { %v341_v17 = vadd.f32 %v340_v19, %v303_v18 }
  0xfe   :  { %v378_v25 = vpop.f32.mrf.mxu1 }
  0xff   :  { %v379_v31 = vadd.f32 %v378_v25, %v341_v17 }
 0x101   :  { %v549_v39 = vrot.slane %v379_v31, 1  ;;  %v567_v40 = vrot.slane %v379_v31, 2  ;;  %v585_v36 = vrot.slane %v379_v31, 3 }
 0x103   :  { %v568_v43 = vsel %vm417_vm0, %v565_v13, %v567_v40  ;;  %v550_v28 = vsel %vm397_vm1, %v547_v14, %v549_v39  ;;  %v586_v47 = vsel %vm437_vm2, %v583_v44, %v585_v36  ;;  %v385_v13 = vadd.s32 16, %v383_v9 }
 0x104   :  { %573 = vrot.lane.b32.xlu2 %v568_v43, %s856_s0  ;;  %555 = vrot.lane.b32.xlu1 %v550_v28, %s857_s16  ;;  %v386_v14 = vcvt.s32.f32 %v383_v9 }
 0x105   :  { %587 = vrot.lane.b32.xlu0 %v582_v33, %s858_s17  ;;  %v388_v24 = vcvt.s32.f32 %v385_v13 }
 0x106   :  { %vm1410_vm3 = vcmp.le.f32.partialorder %v386_v14, %v389_v15 }
 0x107   :  { %vm1417_vm4 = vcmp.le.f32.partialorder %v388_v24, %v389_v15 }
 0x10c   :  { %591 = vrot.lane.b32.xlu2 %v586_v47, %s858_s17  ;;  %589 = vrot.lane.b32.xlu1 %v584_v48, %s858_s17 }
 0x10d   :  { %405 = vrot.lane.b32.xlu0 %v400_v30, %s857_s16 }
 0x114   :  { %407 = vrot.lane.b32.xlu1 %v402_v51, %s857_s16  ;;  %409 = vrot.lane.b32.xlu2 %v404_v38, %s857_s16 }
 0x115   :  { %425 = vrot.lane.b32.xlu0 %v420_v52, %s856_s0 }
 0x11c   :  { %427 = vrot.lane.b32.xlu1 %v422_v58, %s856_s0  ;;  %429 = vrot.lane.b32.xlu2 %v424_v59, %s856_s0 }
 0x11d   :  { %445 = vrot.lane.b32.xlu0 %v440_v61, %s858_s17 }
 0x124   :  { %447 = vrot.lane.b32.xlu1 %v442_v63, %s858_s17  ;;  %449 = vrot.lane.b32.xlu2 %v444_v0, %s858_s17 }
 0x156   :  { %v572_v1 = vpop.permute.xlu2 %571 }
 0x15e   :  { %v574_v2 = vpop.permute.xlu2 %573 }
 0x166   :  { %v592_v60 = vpop.permute.xlu2 %591  ;;  %v552_v3 = vpop.permute.xlu0 %551 }
 0x167   :  { %v570_v5 = vpop.permute.xlu1 %569  ;;  %v560_v10 = vadd.f32 %v552_v3, %v1318_v53  ;;  %v384_v53 = vadd.s32 8, %v383_v9 }
 0x169   :  { %v578_v19 = vadd.f32 %v570_v5, %v560_v10  ;;  %v387_v41 = vcvt.s32.f32 %v384_v53 }
 0x16b   :  { %vm1424_vm5 = vcmp.le.f32.partialorder %v387_v41, %v389_v15 }
 0x16e   :  { %v410_v6 = vpop.permute.xlu2 %409  ;;  %v554_v7 = vpop.permute.xlu0 %553 }
 0x16f   :  { %v561_v25 = vadd.f32 %v554_v7, %v1320_v57  ;;  %v416_v27 = vadd.f32 %v410_v6, %v367_v46 }
 0x171   :  { %v579_v43 = vadd.f32 %v572_v1, %v561_v25 }
 0x176   :  { %v556_v18 = vpop.permute.xlu1 %555  ;;  %v430_v20 = vpop.permute.xlu2 %429 }
 0x177   :  { %v562_v21 = vadd.f32 %v556_v18, %v1334_v8  ;;  %v588_v23 = vpop.permute.xlu0 %587  ;;  %v436_v42 = vadd.f32 %v430_v20, %v416_v27 }
 0x178   :  { %v596_v17 = vadd.f32 %v588_v23, %v578_v19 }
 0x179   :  { %v580_v26 = vadd.f32 %v574_v2, %v562_v21 }
 0x17a   :  { %v599_v12 = vadd.f32 %v596_v17, %v1406_v16 }
 0x17b   :  { %v598_v39 = vadd.f32 %v592_v60, %v580_v26 }
 0x17c   :  { %v602_v40 = vsel %vm1410_vm3, %v599_v12, -1e+09 }
 0x17d   :  { %v601_v32 = vadd.f32 %v598_v39, %v1406_v16  ;;  %v758_v57 = vmul.f32 -1.442695, %v602_v40 }
 0x17e   :  { %v590_v28 = vpop.permute.xlu1 %589  ;;  %v450_v33 = vpop.permute.xlu2 %449 }
 0x17f   :  { %800 = vpow2.f32 %v758_v57  ;;  %v597_v35 = vadd.f32 %v590_v28, %v579_v43  ;;  %v406_v36 = vpop.permute.xlu0 %405  ;;  %v604_v44 = vsel %vm1417_vm4, %v601_v32, -1e+09  ;;  %v456_v34 = vadd.f32 %v450_v33, %v436_v42 }
 0x180   :  { %v760_v46 = vmul.f32 -1.442695, %v604_v44  ;;  %v414_v59 = vadd.f32 %v406_v36, %v1361_v29 }
 0x181   :  { %v600_v47 = vadd.f32 %v597_v35, %v1406_v16  ;;  %v460_v30 = vadd.f32 %v1406_v16, %v456_v34 }
 0x182   :  { %802 = vpow2.f32 %v760_v46 }
 0x183   :  { %v603_v48 = vsel %vm1424_vm5, %v600_v47, -1e+09  ;;  %v463_v38 = vsel %vm1417_vm4, %v460_v30, -1e+09 }
 0x184   :  { %v759_v37 = vmul.f32 -1.442695, %v603_v48  ;;  %v757_v56 = vmul.f32 -1.442695, %v463_v38 }
 0x185   :  { %v801_v49 = vpop.eup %800 }
 0x186   :  { %v614_v50 = vadd.f32 1.0, %v801_v49  ;;  %804 = vpow2.f32 %v759_v37  ;;  %v408_v51 = vpop.permute.xlu1 %407 }
 0x187   :  { %v426_v52 = vpop.permute.xlu0 %425  ;;  %v415_v29 = vadd.f32 %v408_v51, %v1354_v22 }
 0x188   :  { %v803_v54 = vpop.eup %802  ;;  %806 = vrcp.f32 %v614_v50  ;;  %v434_v63 = vadd.f32 %v426_v52, %v414_v59  ;;  %vm622_vm6 = vweird.f32 %v614_v50  ;;  %v626_v19 = vand.u32 2147483647, %v614_v50 }
 0x189   :  { %v1434_v55 = vadd.f32 1.0, %v803_v54  ;;  %v628_v24 = vand.u32 2147483648, %v614_v50 }
 0x18a   :  { %vm627_vm13 = vcmp.eq.f32.partialorder %v626_v19, 8.507059e+37 }
 0x18b   :  { %808 = vrcp.f32 %v1434_v55  ;;  %vm652_vm9 = vweird.f32 %v1434_v55  ;;  %v656_v39 = vand.u32 2147483647, %v1434_v55  ;;  %v658_v40 = vand.u32 2147483648, %v1434_v55 }
 0x18c   :  { %v805_v58 = vpop.eup %804  ;;  %810 = vpow2.f32 %v757_v56  ;;  %v629_v57 = vor.u32 1.1754944e-38, %v628_v24 }
 0x18d   :  { %v1438_v61 = vadd.f32 1.0, %v805_v58  ;;  %vm657_vm1 = vcmp.eq.f32.partialorder %v656_v39, 8.507059e+37  ;;  %v659_v34 = vor.u32 1.1754944e-38, %v658_v40 }
 0x18e   :  { %v807_v62 = vpop.eup %806  ;;  %v428_v0 = vpop.permute.xlu1 %427 }
 0x18f   :  { %v618_v1 = vmul.f32 %v807_v62, %v614_v50  ;;  %812 = vrcp.f32 %v1438_v61  ;;  %v446_v2 = vpop.permute.xlu0 %445  ;;  %v435_v15 = vadd.f32 %v428_v0, %v415_v29  ;;  %vm623_vm8 = vweird.f32 %v807_v62 }
 0x190   :  { %v454_v60 = vadd.f32 %v446_v2, %v434_v63  ;;  %vm1452_vm11 = vmor %vm622_vm6, %vm623_vm8  ;;  %v643_v27 = vand.u32 2147483648, %v1438_v61  ;;  %v641_v32 = vand.u32 2147483647, %v1438_v61  ;;  %vm637_vm15 = vweird.f32 %v1438_v61 }
 0x191   :  { %v809_v3 = vpop.eup %808  ;;  %v619_v4 = vsub.f32 1.0, %v618_v1 }
 0x192   :  { %v648_v5 = vmul.f32 %v809_v3, %v1434_v55  ;;  %v458_v6 = vadd.f32 %v1406_v16, %v454_v60  ;;  %v811_v9 = vpop.eup %810  ;;  %vm653_vm10 = vweird.f32 %v809_v3  ;;  %v644_v44 = vor.u32 1.1754944e-38, %v643_v27 }
 0x193   :  { %v620_v7 = vmul.f32 %v807_v62, %v619_v4  ;;  %v1447_v53 = vadd.f32 1.0, %v811_v9  ;;  %vm1467_vm14 = vmor %vm652_vm9, %vm653_vm10  ;;  %vm642_vm2 = vcmp.eq.f32.partialorder %v641_v32, 8.507059e+37 }
 0x194   :  { %v649_v10 = vsub.f32 1.0, %v648_v5  ;;  %v461_v13 = vsel %vm1410_vm3, %v458_v6, -1e+09 }
 0x195   :  { %v813_v14 = vpop.eup %812  ;;  %v755_v18 = vmul.f32 -1.442695, %v461_v13  ;;  %v621_v23 = vadd.f32 %v807_v62, %v620_v7  ;;  %vm511_vm4 = vweird.f32 %v1447_v53  ;;  %v515_v19 = vand.u32 2147483647, %v1447_v53 }
 0x196   :  { %v633_v20 = vmul.f32 %v813_v14, %v1438_v61  ;;  %v448_v21 = vpop.permute.xlu1 %447  ;;  %v650_v17 = vmul.f32 %v809_v3, %v649_v10  ;;  %vm638_vm12 = vweird.f32 %v813_v14 }
 0x197   :  { %814 = vpow2.f32 %v755_v18  ;;  %v455_v22 = vadd.f32 %v448_v21, %v435_v15  ;;  %v625_v8 = vsel %vm1452_vm11, %v807_v62, %v621_v23  ;;  %vm639_vm0 = vmor %vm637_vm15, %vm638_vm12 }
 0x198   :  { %v634_v25 = vsub.f32 1.0, %v633_v20  ;;  %v651_v26 = vadd.f32 %v809_v3, %v650_v17  ;;  %816 = vrcp.f32 %v1447_v53  ;;  %v630_v36 = vsel %vm627_vm13, %v629_v57, %v625_v8 }
 0x199   :  { %v459_v31 = vadd.f32 %v1406_v16, %v455_v22  ;;  %v662_v30 = vsel %vm521_vm7, %v630_v36, -inf  ;;  %v517_v20 = vand.u32 2147483648, %v1447_v53 }
 0x19a   :  { %v635_v41 = vmul.f32 %v813_v14, %v634_v25  ;;  %v655_v33 = vsel %vm1467_vm14, %v809_v3, %v651_v26 }
 0x19b   :  { %v462_v16 = vsel %vm1424_vm5, %v459_v31, -1e+09  ;;  %v660_v48 = vsel %vm657_vm1, %v659_v34, %v655_v33  ;;  %vm534_vm5 = vcmask 41985   ;;  %v518_v27 = vor.u32 1.1754944e-38, %v517_v20 }
 0x19c   :  { %v756_v43 = vmul.f32 -1.442695, %v462_v16  ;;  %v636_v28 = vadd.f32 %v813_v14, %v635_v41  ;;  %v664_v51 = vsel %vm521_vm7, %v660_v48, -inf  ;;  %vm691_vm1 = vcmask 10242  }
 0x19d   :  { %v815_v35 = vpop.eup %814 }
 0x19e   :  { %v473_v45 = vadd.f32 1.0, %v815_v35  ;;  %818 = vpow2.f32 %v756_v43  ;;  %v640_v46 = vsel %vm639_vm0, %v813_v14, %v636_v28  ;;  %v817_v49 = vpop.eup %816  ;;  %vm516_vm0 = vcmp.eq.f32.partialorder %v515_v19, 8.507059e+37 }
 0x19f   :  { %v645_v47 = vsel %vm642_vm2, %v644_v44, %v640_v46  ;;  %v507_v54 = vmul.f32 %v817_v49, %v1447_v53  ;;  %vm512_vm6 = vweird.f32 %v817_v49 }
 0x1a0   :  { %820 = vrcp.f32 %v473_v45  ;;  %v663_v37 = vsel %vm521_vm7, %v645_v47, -inf  ;;  %v487_v29 = vand.u32 2147483648, %v473_v45  ;;  %vm481_vm8 = vweird.f32 %v473_v45  ;;  %vm513_vm11 = vmor %vm511_vm4, %vm512_vm6 }
 0x1a1   :  { %v665_v50 = vmax.f32 %v662_v30, %v663_v37  ;;  %v508_v62 = vsub.f32 1.0, %v507_v54  ;;  %v485_v10 = vand.u32 2147483647, %v473_v45  ;;  %v699_v37 = vrot.slane %v1402_v11, 3 }
 0x1a2   :  { %v488_v24 = vor.u32 1.1754944e-38, %v487_v29  ;;  %vm737_vm6 = vcmask 11267  }
 0x1a3   :  { %v666_v38 = vmax.f32 %v665_v50, %v664_v51  ;;  %v509_v60 = vmul.f32 %v817_v49, %v508_v62  ;;  %vm486_vm13 = vcmp.eq.f32.partialorder %v485_v10, 8.507059e+37 }
 0x1a4   :  { %v819_v52 = vpop.eup %818 }
 0x1a5   :  { %v474_v55 = vadd.f32 1.0, %v819_v52  ;;  %v667_v56 = vrot.slane %v666_v38, 4  ;;  %v510_v13 = vadd.f32 %v817_v49, %v509_v60 }
 0x1a6   :  { %v821_v58 = vpop.eup %820 }
 0x1a7   :  { %v477_v59 = vmul.f32 %v821_v58, %v473_v45  ;;  %822 = vrcp.f32 %v474_v55  ;;  %v668_v61 = vmax.f32 %v666_v38, %v667_v56  ;;  %vm482_vm3 = vweird.f32 %v821_v58 }
 0x1a8   :  { %vm1480_vm9 = vmor %vm481_vm8, %vm482_vm3  ;;  %v502_v18 = vand.u32 2147483648, %v474_v55  ;;  %v500_v17 = vand.u32 2147483647, %v474_v55  ;;  %vm496_vm12 = vweird.f32 %v474_v55  ;;  %v514_v26 = vsel %vm513_vm11, %v817_v49, %v510_v13 }
 0x1a9   :  { %v478_v63 = vsub.f32 1.0, %v477_v59  ;;  %v669_v0 = vrot.slane %v668_v61, 2  ;;  %v519_v41 = vsel %vm516_vm0, %v518_v27, %v514_v26  ;;  %v688_v49 = vrot.slane %v1402_v11, 2 }
 0x1aa   :  { %v503_v12 = vor.u32 1.1754944e-38, %v502_v18  ;;  %vm501_vm15 = vcmp.eq.f32.partialorder %v500_v17, 8.507059e+37  ;;  %v524_v16 = vsel %vm521_vm7, %v519_v41, -inf }
 0x1ab   :  { %v479_v1 = vmul.f32 %v821_v58, %v478_v63  ;;  %v670_v2 = vmax.f32 %v668_v61, %v669_v0 }
 0x1ad   :  { %v823_v3 = vpop.eup %822  ;;  %v671_v4 = vrot.slane %v670_v2, 1  ;;  %v480_v6 = vadd.f32 %v821_v58, %v479_v1 }
 0x1ae   :  { %v492_v5 = vmul.f32 %v823_v3, %v474_v55  ;;  %vm497_vm10 = vweird.f32 %v823_v3 }
 0x1af   :  { %v672_v7 = vmax.f32 %v670_v2, %v671_v4  ;;  %v484_v23 = vsel %vm1480_vm9, %v821_v58, %v480_v6  ;;  %vm498_vm14 = vmor %vm496_vm12, %vm497_vm10  ;;  %v860_v58 = vmov 5.0  }
 0x1b0   :  { %v493_v9 = vsub.f32 1.0, %v492_v5  ;;  %v489_v31 = vsel %vm486_vm13, %v488_v24, %v484_v23  ;;  %824 = vrcp.f32 %v860_v58 }
 0x1b1   :  { %v673_v14 = vmul.f32 %v672_v7, %v1402_v11  ;;  %v522_v8 = vsel %vm521_vm7, %v489_v31, -inf }
 0x1b2   :  { %v494_v21 = vmul.f32 %v823_v3, %v493_v9 }
 0x1b3   :  { %v674_v22 = vsel %vm534_vm5, %v673_v14, 0.0 }
 0x1b4   :  { %675 = vadd.xlane.f32.xlu0 %v674_v22  ;;  %v495_v25 = vadd.f32 %v823_v3, %v494_v21 }
 0x1b6   :  { %v499_v39 = vsel %vm498_vm14, %v823_v3, %v495_v25  ;;  %v825_v59 = vpop.eup %824 }
 0x1b7   :  { %v504_v40 = vsel %vm501_vm15, %v503_v12, %v499_v39  ;;  %v711_v61 = vmul.f32 5.0, %v825_v59  ;;  %vm715_vm2 = vweird.f32 %v825_v59 }
 0x1b8   :  { %v523_v32 = vsel %vm521_vm7, %v504_v40, -inf  ;;  %vm685_vm7 = vcmask 7168  }
 0x1b9   :  { %v525_v53 = vmax.f32 %v522_v8, %v523_v32  ;;  %v712_v62 = vsub.f32 1.0, %v711_v61 }
 0x1bb   :  { %v526_v57 = vmax.f32 %v525_v53, %v524_v16  ;;  %v713_v63 = vmul.f32 %v825_v59, %v712_v62 }
 0x1bd   :  { %v527_v42 = vrot.slane %v526_v57, 4  ;;  %v714_v0 = vadd.f32 %v825_v59, %v713_v63 }
 0x1bf   :  { %v528_v43 = vmax.f32 %v526_v57, %v527_v42  ;;  %v716_v5 = vsel %vm715_vm2, %v825_v59, %v714_v0 }
 0x1c1   :  { %v529_v28 = vrot.slane %v528_v43, 2 }
 0x1c3   :  { %v530_v33 = vmax.f32 %v528_v43, %v529_v28 }
 0x1c5   :  { %v531_v35 = vrot.slane %v530_v33, 1 }
 0x1c7   :  { %v532_v36 = vmax.f32 %v530_v33, %v531_v35 }
 0x1c9   :  { %v533_v44 = vmul.f32 %v532_v36, %v1402_v11 }
 0x1cb   :  { %v535_v34 = vsel %vm534_vm5, %v533_v44, 0.0 }
 0x1cc   :  { %536 = vadd.xlane.f32.xlu1 %v535_v34 }
 0x227   :  { %v676_v45 = vpop.xlane.xlu0 %675 }
 0x228   :  { %v678_v46 = vrot.slane %v676_v45, 7 }
 0x22a   :  { %v680_v47 = vadd.f32 %v678_v46, %v1402_v11 }
 0x22c   :  { %682 = vrot.lane.b32.xlu2 %v680_v47, %s859_s2 }
 0x23f   :  { %v537_v48 = vpop.xlane.xlu1 %536 }
 0x240   :  { %v539_v30 = vrot.slane %v537_v48, 7 }
 0x242   :  { %v541_v50 = vadd.f32 %v539_v30, %v1402_v11 }
 0x286   :  { %v683_v51 = vpop.permute.xlu2 %682 }
 0x287   :  { %v686_v38 = vsel %vm685_vm7, %v541_v50, %v683_v51 }
 0x288   :  { %v701_v52 = vmul.f32 %v699_v37, %v686_v38  ;;  %v690_v54 = vmul.f32 %v688_v49, %v686_v38 }
 0x28a   :  { %v702_v55 = vsel %vm691_vm1, %v701_v52, 0.0  ;;  %v692_v56 = vsel %vm691_vm1, %v690_v54, 0.0 }
 0x28b   :  { %703 = vadd.xlane.f32.xlu0 %v702_v55  ;;  %693 = vadd.xlane.f32.xlu2 %v692_v56 }
 0x2fe   :  { %v704_v1 = vpop.xlane.xlu0 %703  ;;  %v694_v2 = vpop.xlane.xlu2 %693 }
 0x2ff   :  { %v706_v60 = vrot.slane %v704_v1, 7  ;;  %v696_v3 = vrot.slane %v694_v2, 7 }
 0x301   :  { %v708_v4 = vadd.f32 %v706_v60, %v1402_v11  ;;  %v698_v6 = vadd.f32 %v696_v3, %v1402_v11 }
 0x303   :  { %v709_v7 = vsel %vm685_vm7, %v698_v6, %v708_v4 }
 0x304   :  { %v717_v29 = vmul.f32 %v716_v5, %v709_v7 }
 0x306   :  { %v761_v9 = vmul.f32 -1.442695, %v717_v29 }
 0x308   :  { %826 = vpow2.f32 %v761_v9 }
 0x30e   :  { %v827_v10 = vpop.eup %826 }
 0x30f   :  { %v721_v13 = vadd.f32 1.0, %v827_v10 }
 0x311   :  { %828 = vrcp.f32 %v721_v13  ;;  %v733_v19 = vand.u32 2147483648, %v721_v13  ;;  %v731_v21 = vand.u32 2147483647, %v721_v13  ;;  %vm727_vm4 = vweird.f32 %v721_v13 }
 0x313   :  { %v734_v23 = vor.u32 1.1754944e-38, %v733_v19  ;;  %vm732_vm8 = vcmp.eq.f32.partialorder %v731_v21, 8.507059e+37 }
 0x317   :  { %v829_v14 = vpop.eup %828 }
 0x318   :  { %v723_v15 = vmul.f32 %v829_v14, %v721_v13  ;;  %vm728_vm3 = vweird.f32 %v829_v14 }
 0x319   :  { %vm729_vm5 = vmor %vm727_vm4, %vm728_vm3 }
 0x31a   :  { %v724_v18 = vsub.f32 1.0, %v723_v15 }
 0x31c   :  { %v725_v20 = vmul.f32 %v829_v14, %v724_v18 }
 0x31e   :  { %v726_v11 = vadd.f32 %v829_v14, %v725_v20 }
 0x320   :  { %v730_v17 = vsel %vm729_vm5, %v829_v14, %v726_v11 }
 0x321   :  { %v735_v22 = vsel %vm732_vm8, %v734_v23, %v730_v17 }
 0x322   :  { %738 = vst.msk [vmem:[#allocation2 - $0x3] sm:$0x8] %vm737_vm6, %v735_v22 }
 0x323   :  { %749 = dma.vmem_to_hbm [thread:$0]  %s745_s21, 16, %s747_s24, [#allocation3]  }
 0x324   :  { %854 = dma.done.wait [#allocation3], 16  }
 0x325   :  { %855 = vsyncadd [#allocation3], 4294967280 }
 0x326   :  { %754 = vsyncpa [#allocation3], 1 }

</bundles_post_ra>
